<compile_context>
chip_gen: v6e
topology: v6e:2x2x1
jax: 0.10.0
libtpu: 0.0.40
codegen_flags: <defaults>
</compile_context>

<pallas_src>
import functools

import jax
import jax.numpy as jnp
from jax import lax
from jax.experimental import pallas as pl
from jax.experimental.pallas import tpu as pltpu


def _round_up(x, m):
    return ((x + m - 1) // m) * m


def _is_megacore_chip():
    # v7x has 2 TensorCores per chip; only then is it worth capping the batch tile so the
    # ("parallel",) grid has >= 2 steps. v5e/v6e are single-TC, where extra steps are pure
    # pipeline overhead.
    try:
        kind = jax.devices()[0].device_kind.lower()
    except Exception:
        return False
    return ("v7" in kind) or ("7x" in kind)


def _mlp_kernel(x_ref, w1_ref, b1_ref, w2t_ref, b2t_ref, ot_ref, *, compute_dtype):
    # fc1 on the MXU: cast the x tile in-kernel (bf16 by default), accumulate in f32,
    # add bias and ReLU fused on the VPU.
    x = x_ref[...].astype(compute_dtype)
    h = jnp.dot(x, w1_ref[...], preferred_element_type=jnp.float32) + b1_ref[...]
    h = jnp.maximum(h, 0.0).astype(compute_dtype)
    # fc2, transposed output: w2t is (out_pad8, hid); contract the hidden dim of both
    # operands (h is (bm, hid)) -> (out_pad8, bm) tile with batch on the lane axis.
    out_t = lax.dot_general(
        w2t_ref[...], h,
        dimension_numbers=(((1,), (1,)), ((), ())),
        preferred_element_type=jnp.float32,
    ) + b2t_ref[...]
    ot_ref[...] = out_t.astype(ot_ref.dtype)


def simple_nn_forward(x, w1, b1, w2, b2, *, block_batch=1024, compute_dtype=jnp.bfloat16):
    """x: [B, input_size]; w1: [input_size, 128]; b1: [128]; w2: [128, 2]; b2: [2]."""
    B, in_dim = x.shape
    hid = w1.shape[1]
    out_dim = w2.shape[1]
    out_dtype = x.dtype

    LANE = 128
    SUBLANE = 8

    # fc2 parameters laid out for the transposed output:
    #   out_T[o, b] = sum_k w2[k, o] * h[b, k]
    # w2t: (out_pad8, hid) pre-transposed + sublane-padded; b2t: (out_pad8, 1).
    out_pad = _round_up(max(out_dim, SUBLANE), SUBLANE)          # 2 -> 8 sublanes
    w2t = (jnp.zeros((out_pad, hid), dtype=w2.dtype)
           .at[:out_dim, :].set(w2.T)).astype(compute_dtype)
    b2t = (jnp.zeros((out_pad, 1), dtype=jnp.float32)
           .at[:out_dim, 0].set(b2.astype(jnp.float32)))
    b1_2d = b1.astype(jnp.float32).reshape(1, hid)
    w1c = w1.astype(compute_dtype)                                # tiny, one-time cast

    # Batch tile: multiple of 128 so the batch sits lane-dense in the transposed output
    # store; as large as block_batch allows. Only cap at ~B/2 on megacore (v7x) so both
    # TensorCores get a "parallel" grid step; on 1-TC chips use the biggest tile.
    bm_cap = _round_up(max(B, LANE), LANE)
    if _is_megacore_chip() and B > LANE:
        bm_cap = max(LANE, _round_up(pl.cdiv(B, 2), LANE))
    bm = min(max(LANE, _round_up(block_batch, LANE)), bm_cap)
    B_pad = _round_up(B, bm)
    if B_pad != B:
        # TODO(synk): for very large ragged batches, switch to a cdiv grid with a partial
        # last block to avoid this extra HBM pass over x.
        x = jnp.pad(x, ((0, B_pad - B), (0, 0)))
    grid = (B_pad // bm,)

    x_bytes = jnp.dtype(x.dtype).itemsize
    cd_bytes = jnp.dtype(compute_dtype).itemsize
    cost = pl.CostEstimate(
        flops=2 * B_pad * hid * (in_dim + out_pad),
        transcendentals=0,
        bytes_accessed=(
            B_pad * in_dim * x_bytes                               # x read
            + out_pad * B_pad * jnp.dtype(out_dtype).itemsize      # transposed out write
            + (in_dim * hid + out_pad * hid) * cd_bytes            # w1, w2t
            + (hid + out_pad) * 4                                  # b1, b2t
        ),
    )

    kernel = functools.partial(_mlp_kernel, compute_dtype=compute_dtype)

    out_t = pl.pallas_call(
        kernel,
        out_shape=jax.ShapeDtypeStruct((out_pad, B_pad), out_dtype),
        grid_spec=pltpu.PrefetchScalarGridSpec(
            num_scalar_prefetch=0,
            grid=grid,
            in_specs=[
                pl.BlockSpec((bm, in_dim), lambda i: (i, 0)),      # x tile (pipelined)
                # Constant block indices -> weights/biases stay resident in VMEM.
                pl.BlockSpec((in_dim, hid), lambda i: (0, 0)),     # w1
                pl.BlockSpec((1, hid), lambda i: (0, 0)),          # b1
                pl.BlockSpec((out_pad, hid), lambda i: (0, 0)),    # w2^T (sublane-padded)
                pl.BlockSpec((out_pad, 1), lambda i: (0, 0)),      # b2^T
            ],
            out_specs=pl.BlockSpec((out_pad, bm), lambda i: (0, i)),
        ),
        compiler_params=pltpu.CompilerParams(
            dimension_semantics=("parallel",),
        ),
        cost_estimate=cost,
    )(x, w1c, b1_2d, w2t, b2t)

    # Drop the sublane/batch padding and return in the module's natural (B, out_dim) layout.
    return out_t[:out_dim, :B].T


def reference_forward(x, w1, b1, w2, b2):
    h = jnp.maximum(x @ w1 + b1, 0.0)
    return h @ w2 + b2


if __name__ == "__main__":
    key = jax.random.PRNGKey(0)
    batch = 64
    input_size = 16
    hidden = 128
    out_dim = 2

    kx, kw1, kb1, kw2, kb2 = jax.random.split(key, 5)

    x = jax.random.normal(kx, (batch, input_size), dtype=jnp.float32)

    # Deterministic parameter init (PyTorch Linear stores [out, in]; we build [in, out] directly).
    bound1 = 1.0 / jnp.sqrt(jnp.float32(input_size))
    w1 = jax.random.uniform(kw1, (input_size, hidden), jnp.float32, -bound1, bound1)
    b1 = jax.random.uniform(kb1, (hidden,), jnp.float32, -bound1, bound1)

    bound2 = 1.0 / jnp.sqrt(jnp.float32(hidden))
    w2 = jax.random.uniform(kw2, (hidden, out_dim), jnp.float32, -bound2, bound2)
    b2 = jax.random.uniform(kb2, (out_dim,), jnp.float32, -bound2, bound2)

    ref = reference_forward(x, w1, b1, w2, b2)

    # Default path: bf16 MXU feed, f32 accumulation -> loose tolerance.
    out = jax.block_until_ready(simple_nn_forward(x, w1, b1, w2, b2))
    assert out.shape == (batch, out_dim)
    assert jnp.allclose(out, ref, atol=2e-2, rtol=2e-2), "bf16 path mismatch vs reference"

    # Full-f32 path: tight tolerance validates exact forward semantics.
    out32 = jax.block_until_ready(
        simple_nn_forward(x, w1, b1, w2, b2, compute_dtype=jnp.float32))
    assert jnp.allclose(out32, ref, atol=1e-4, rtol=1e-4), "f32 path mismatch vs reference"

    # Ragged batch (not a multiple of the 128-row tile) exercises the padding path.
    x_r = jax.random.normal(kx, (batch - 3, input_size), dtype=jnp.float32)
    out_r = jax.block_until_ready(simple_nn_forward(x_r, w1, b1, w2, b2))
    assert out_r.shape == (batch - 3, out_dim)
    assert jnp.allclose(out_r, reference_forward(x_r, w1, b1, w2, b2), atol=2e-2, rtol=2e-2)

    print("KERNEL_OK")
</pallas_src>

<mosaic_0001>
module attributes {stable_mosaic.version = 11 : i64} {
  func.func @_mlp_kernel(%arg0: i32, %arg1: memref<128x16xf32, #tpu.memory_space<vmem>>, %arg2: memref<16x128xbf16, #tpu.memory_space<vmem>>, %arg3: memref<1x128xf32, #tpu.memory_space<vmem>>, %arg4: memref<8x128xbf16, #tpu.memory_space<vmem>>, %arg5: memref<8x1xf32, #tpu.memory_space<vmem>>, %arg6: memref<8x128xf32, #tpu.memory_space<vmem>>) attributes {dimension_semantics = [#tpu.dimension_semantics<parallel>], iteration_bounds = array<i64: 1>, scalar_prefetch = 0 : i64, scratch_operands = 0 : i64, tpu.core_type = #tpu.core_type<tc>, window_params = [{transform_indices = @transform_0, window_bounds = array<i64: 128, 16>}, {pipeline_mode = #tpu.pipeline_mode<synchronous>, transform_indices = @transform_1, window_bounds = array<i64: 16, 128>}, {pipeline_mode = #tpu.pipeline_mode<synchronous>, transform_indices = @transform_2, window_bounds = array<i64: 1, 128>}, {pipeline_mode = #tpu.pipeline_mode<synchronous>, transform_indices = @transform_3, window_bounds = array<i64: 8, 128>}, {pipeline_mode = #tpu.pipeline_mode<synchronous>, transform_indices = @transform_4, window_bounds = array<i64: 8, 1>}, {transform_indices = @transform_5, window_bounds = array<i64: 8, 128>}]} {
    %c0 = arith.constant 0 : index
    %c0_0 = arith.constant 0 : index
    %0 = vector.load %arg1[%c0, %c0_0] : memref<128x16xf32, #tpu.memory_space<vmem>>, vector<128x16xf32>
    %1 = arith.truncf %0 : vector<128x16xf32> to vector<128x16xbf16>
    %c0_1 = arith.constant 0 : index
    %c0_2 = arith.constant 0 : index
    %2 = vector.load %arg2[%c0_1, %c0_2] : memref<16x128xbf16, #tpu.memory_space<vmem>>, vector<16x128xbf16>
    %cst = arith.constant dense<0.000000e+00> : vector<128x128xf32>
    %3 = tpu.matmul %1, %2, %cst {dimension_numbers = #tpu.dot_dimension_numbers<[1], [0], [0], [1], [0, 0, 1, 1], [], []>} : vector<128x16xbf16>, vector<16x128xbf16>, vector<128x128xf32> -> vector<128x128xf32>
    %c0_3 = arith.constant 0 : index
    %c0_4 = arith.constant 0 : index
    %4 = vector.load %arg3[%c0_3, %c0_4] : memref<1x128xf32, #tpu.memory_space<vmem>>, vector<1x128xf32>
    %5 = vector.broadcast %4 : vector<1x128xf32> to vector<128x128xf32>
    %6 = arith.addf %3, %5 : vector<128x128xf32>
    %cst_5 = arith.constant 0.000000e+00 : f32
    %7 = vector.broadcast %cst_5 : f32 to vector<128x128xf32>
    %8 = arith.maximumf %6, %7 : vector<128x128xf32>
    %9 = arith.truncf %8 : vector<128x128xf32> to vector<128x128xbf16>
    %c0_6 = arith.constant 0 : index
    %c0_7 = arith.constant 0 : index
    %10 = vector.load %arg4[%c0_6, %c0_7] : memref<8x128xbf16, #tpu.memory_space<vmem>>, vector<8x128xbf16>
    %cst_8 = arith.constant dense<0.000000e+00> : vector<8x128xf32>
    %11 = tpu.matmul %10, %9, %cst_8 {dimension_numbers = #tpu.dot_dimension_numbers<[1], [1], [0], [0], [0, 0, 1, 0], [], []>} : vector<8x128xbf16>, vector<128x128xbf16>, vector<8x128xf32> -> vector<8x128xf32>
    %c0_9 = arith.constant 0 : index
    %c0_10 = arith.constant 0 : index
    %12 = vector.load %arg5[%c0_9, %c0_10] : memref<8x1xf32, #tpu.memory_space<vmem>>, vector<8x1xf32>
    %13 = vector.broadcast %12 : vector<8x1xf32> to vector<8x128xf32>
    %14 = arith.addf %11, %13 : vector<8x128xf32>
    %c0_11 = arith.constant 0 : index
    %c0_12 = arith.constant 0 : index
    %15 = vector.load %arg6[%c0_11, %c0_12] : memref<8x128xf32, #tpu.memory_space<vmem>>, vector<8x128xf32>
    tpu.vector_store %arg6[%c0_11, %c0_12], %14 {strides = array<i32>} : memref<8x128xf32, #tpu.memory_space<vmem>>, vector<8x128xf32>,
    return
  }
  func.func @transform_0(%arg0: i32) -> (i32, i32) {
    %c0_i32 = arith.constant 0 : i32
    %c0_i32_0 = arith.constant 0 : i32
    return %arg0, %c0_i32 : i32, i32
  }
  func.func @transform_1(%arg0: i32) -> (i32, i32) {
    %c0_i32 = arith.constant 0 : i32
    %c0_i32_0 = arith.constant 0 : i32
    %c0_i32_1 = arith.constant 0 : i32
    return %c0_i32, %c0_i32_0 : i32, i32
  }
  func.func @transform_2(%arg0: i32) -> (i32, i32) {
    %c0_i32 = arith.constant 0 : i32
    %c0_i32_0 = arith.constant 0 : i32
    %c0_i32_1 = arith.constant 0 : i32
    return %c0_i32, %c0_i32_0 : i32, i32
  }
  func.func @transform_3(%arg0: i32) -> (i32, i32) {
    %c0_i32 = arith.constant 0 : i32
    %c0_i32_0 = arith.constant 0 : i32
    %c0_i32_1 = arith.constant 0 : i32
    return %c0_i32, %c0_i32_0 : i32, i32
  }
  func.func @transform_4(%arg0: i32) -> (i32, i32) {
    %c0_i32 = arith.constant 0 : i32
    %c0_i32_0 = arith.constant 0 : i32
    %c0_i32_1 = arith.constant 0 : i32
    return %c0_i32, %c0_i32_0 : i32, i32
  }
  func.func @transform_5(%arg0: i32) -> (i32, i32) {
    %c0_i32 = arith.constant 0 : i32
    %c0_i32_0 = arith.constant 0 : i32
    return %c0_i32, %arg0 : i32, i32
  }
}

</mosaic_0001>

<bundles_post_ra>
// kernel: tpu_custom_call.1
= control target key start
LH: loop header
LB: loop body
LE: loop exit
PB: predicated region body
PF: predicated region fallthrough
CT: control target
= control target key end

     0   :  { %vm61_vm0 = vcmask 130048   ;;  %s477_s0 = inlined_call_operand.vmem [shape: f32[128,16], index: 0, kind: input, shape index: {}]   ;;  %s478_s1 = inlined_call_operand.vmem [shape: bf16[16,128], index: 1, kind: input, shape index: {}]   ;;  %s479_s2 = inlined_call_operand.vmem [shape: f32[1,128], index: 2, kind: input, shape index: {}]   ;;  %s480_s3 = inlined_call_operand.vmem [shape: bf16[8,128], index: 3, kind: input, shape index: {}]   ;;  %s481_s4 = inlined_call_operand.vmem [shape: f32[8,1], index: 4, kind: input, shape index: {}]   ;;  %s482_s5 = inlined_call_operand.hbm [shape: f32[8,128], index: 5, kind: output, shape index: {}]  }
   0x1   :  { %v340_v0 = vld [vmem:[%s478_s1] sm:$0xff]   ;;  %v23_v2 = vld [vmem:[%s477_s0 + $0x8] sm:$0xff]  ;;  %v24_v3 = vld [vmem:[%s477_s0 + $0x10] sm:$0xff] }
   0x2   :  { %v22_v1 = vld [vmem:[%s477_s0] sm:$0xff]  ;;  %297 = vmatprep.subr.bf16.mxu0 %v340_v0  ;;  %v25_v5 = vld [vmem:[%s477_s0 + $0x18] sm:$0xff]  ;;  %v27_v7 = vld [vmem:[%s477_s0 + $0x28] sm:$0xff] }
   0x3   :  { %v38_v4 = vpack.c.bf16 %v23_v2, %v22_v1  ;;  %v26_v6 = vld [vmem:[%s477_s0 + $0x20] sm:$0xff]  ;;  %298 = vmatpush3.bf16.msra.mxu0 %v340_v0  ;;  %v39_v8 = vpack.c.bf16 %v25_v5, %v24_v3 }
   0x4   :  { %v40_v9 = vpack.c.bf16 %v27_v7, %v26_v6 }
   0x5   :  { %299 = vmatprep.mubr.msk.bf16.mxu0 %vm61_vm0, %v38_v4 }
   0x6   :  { %300 = vmatmul.mubr.msk.bf16.vlgmr.msra.gmra.mxu0 %vm61_vm0, %v39_v8 }
   0x7   :  { %10 = vsyncpa [#allocation3], 0  ;;  %303 = vmatprep.mubr.msk.bf16.mxu0 %vm61_vm0, %v40_v9  ;;  %v28_v10 = vld [vmem:[%s477_s0 + $0x30] sm:$0xff]  ;;  %v29_v11 = vld [vmem:[%s477_s0 + $0x38] sm:$0xff]  ;;  %v363_v25 = vmov 0.0   ;;  %vm364_vm1 = vmmov 0  }
   0x8   :  { %v30_v12 = vld [vmem:[%s477_s0 + $0x40] sm:$0xff]  ;;  %v31_v13 = vld [vmem:[%s477_s0 + $0x48] sm:$0xff]  ;;  %v41_v14 = vpack.c.bf16 %v29_v11, %v28_v10  ;;  %v32_v16 = vld [vmem:[%s477_s0 + $0x50] sm:$0xff]  ;;  %315 = vmatprep.subr.bf16.mxu1 %v363_v25  ;;  %331 = vmatprep.mubr.msk.bf16.mxu1 %vm364_vm1, %v363_v25  ;;  %v365_v27 = vmov 0  }
   0x9   :  { %v42_v15 = vpack.c.bf16 %v31_v13, %v30_v12  ;;  %v33_v17 = vld [vmem:[%s477_s0 + $0x58] sm:$0xff]  ;;  %v34_v18 = vld [vmem:[%s477_s0 + $0x60] sm:$0xff]  ;;  %v35_v19 = vld [vmem:[%s477_s0 + $0x68] sm:$0xff]  ;;  %339 = vset.pattern.permute.xlu0 %v365_v27 }
   0xa   :  { %v43_v20 = vpack.c.bf16 %v33_v17, %v32_v16  ;;  %v44_v21 = vpack.c.bf16 %v35_v19, %v34_v18  ;;  %v36_v22 = vld [vmem:[%s477_s0 + $0x70] sm:$0xff]  ;;  %v37_v23 = vld [vmem:[%s477_s0 + $0x78] sm:$0xff]  ;;  %v208_v26 = vld [vmem:[%s481_s4] sm:$0xff]  ;;  %s366_s4 = smov [#allocation2]  }
   0xb   :  { %v45_v24 = vpack.c.bf16 %v37_v23, %v36_v22  ;;  %211 = vperm.xlu0 %339, %v208_v26   ;;  %v269_v29 = vld [vmem:[%s479_s2] ss:$0 sm:$0xff]  ;;  %s261_s29 = sshll.u32 %s366_s4, 4  ;;  %s262_s29 = int_to_ptr.vmem [resolvable:$true] %s261_s29 }
   0xc   :  { %s341_s30 = scalar_lea.vmem %s262_s29, 128  ;;  %p346_p1 = scmp.lt.s32.totalorder %s262_s29, %s262_s29 }
   0xd   :  { %p342_p0 = scmp.ne.s32.totalorder %s262_s29, %s341_s30  ;;  %p347_p2 = scmp.lt.s32.totalorder %s341_s30, %s341_s30 }
   0xe   :  { %304 = vmatmul.mubr.msk.bf16.gmra.mxu0 %vm61_vm0, %v41_v14 }
   0xf   :  { %307 = vmatprep.mubr.msk.bf16.mxu0 %vm61_vm0, %v42_v15  ;;  %p348_p3 = por %p347_p2, %p346_p1 }
  0x11   :  { %p349_p4 = pnand %p348_p3, %p342_p0 }
  0x16   :  { %308 = vmatmul.mubr.msk.bf16.gmra.mxu0 %vm61_vm0, %v43_v20 }
  0x17   :  { %311 = vmatprep.mubr.msk.bf16.mxu0 %vm61_vm0, %v44_v21  ;;  %v207_v21 = vld [vmem:[%s480_s3] sm:$0xf] }
  0x1e   :  { %312 = vmatmul.mubr.msk.bf16.gmra.mxu0 %vm61_vm0, %v45_v24 }
  0x86   :  { %v212_v22 = vpop.permute.xlu0 %211 }
  0xc6   :  { %v301_v28 = vpop.f32.mrf.mxu0 }
  0xc7   :  { %v129_v31 = vadd.f32 %v301_v28, %v269_v29 }
  0xc8   :  { %v120_v30 = vpop.f32.mrf.mxu0 }
  0xc9   :  { %v121_v33 = vadd.f32 %v269_v29, %v120_v30  ;;  %v185_v36 = vmax.f32 %v129_v31, 0.0 }
  0xca   :  { %v302_v32 = vpop.f32.mrf.mxu0 }
  0xcb   :  { %v132_v34 = vadd.f32 %v302_v32, %v269_v29  ;;  %v183_v40 = vmax.f32 %v121_v33, 0.0 }
  0xcc   :  { %v123_v35 = vpop.f32.mrf.mxu0 }
  0xcd   :  { %v186_v37 = vmax.f32 %v132_v34, 0.0  ;;  %v124_v38 = vadd.f32 %v269_v29, %v123_v35 }
  0xce   :  { %v305_v39 = vpop.f32.mrf.mxu0 }
  0xcf   :  { %v200_v41 = vpack.c.bf16 %v186_v37, %v185_v36  ;;  %v184_v42 = vmax.f32 %v124_v38, 0.0  ;;  %v145_v12 = vadd.f32 %v305_v39, %v269_v29 }
  0xd0   :  { %v136_v43 = vpop.f32.mrf.mxu0 }
  0xd1   :  { %v199_v44 = vpack.c.bf16 %v184_v42, %v183_v40  ;;  %v189_v14 = vmax.f32 %v145_v12, 0.0  ;;  %v137_v17 = vadd.f32 %v269_v29, %v136_v43 }
  0xd2   :  { %v306_v45 = vpop.f32.mrf.mxu0 }
  0xd3   :  { %v148_v10 = vadd.f32 %v306_v45, %v269_v29  ;;  %v187_v19 = vmax.f32 %v137_v17, 0.0 }
  0xd4   :  { %v139_v46 = vpop.f32.mrf.mxu0 }
  0xd5   :  { %v190_v13 = vmax.f32 %v148_v10, 0.0  ;;  %v140_v16 = vadd.f32 %v269_v29, %v139_v46 }
  0xd6   :  { %v309_v47 = vpop.f32.mrf.mxu0 }
  0xd7   :  { %v161_v2 = vadd.f32 %v309_v47, %v269_v29  ;;  %v202_v15 = vpack.c.bf16 %v190_v13, %v189_v14  ;;  %v188_v18 = vmax.f32 %v140_v16, 0.0 }
  0xd8   :  { %v152_v48 = vpop.f32.mrf.mxu0 }
  0xd9   :  { %v193_v4 = vmax.f32 %v161_v2, 0.0  ;;  %v153_v7 = vadd.f32 %v269_v29, %v152_v48  ;;  %v201_v20 = vpack.c.bf16 %v188_v18, %v187_v19 }
  0xda   :  { %v310_v49 = vpop.f32.mrf.mxu0 }
  0xdb   :  { %v164_v0 = vadd.f32 %v310_v49, %v269_v29  ;;  %v191_v9 = vmax.f32 %v153_v7, 0.0 }
  0xdc   :  { %v155_v50 = vpop.f32.mrf.mxu0 }
  0xdd   :  { %v194_v3 = vmax.f32 %v164_v0, 0.0  ;;  %v156_v6 = vadd.f32 %v269_v29, %v155_v50 }
  0xde   :  { %v313_v51 = vpop.f32.mrf.mxu0 }
  0xdf   :  { %v177_v53 = vadd.f32 %v313_v51, %v269_v29  ;;  %v204_v5 = vpack.c.bf16 %v194_v3, %v193_v4  ;;  %v192_v8 = vmax.f32 %v156_v6, 0.0 }
  0xe0   :  { %v168_v52 = vpop.f32.mrf.mxu0 }
  0xe1   :  { %v197_v57 = vmax.f32 %v177_v53, 0.0  ;;  %v169_v61 = vadd.f32 %v269_v29, %v168_v52  ;;  %v203_v11 = vpack.c.bf16 %v192_v8, %v191_v9 }
  0xe2   :  { %v314_v54 = vpop.f32.mrf.mxu0 }
  0xe3   :  { %v180_v55 = vadd.f32 %v314_v54, %v269_v29  ;;  %v195_v63 = vmax.f32 %v169_v61, 0.0 }
  0xe4   :  { %v171_v56 = vpop.f32.mrf.mxu0 }
  0xe5   :  { %v198_v58 = vmax.f32 %v180_v55, 0.0  ;;  %v172_v59 = vadd.f32 %v269_v29, %v171_v56 }
  0xe7   :  { %v206_v60 = vpack.c.bf16 %v198_v58, %v197_v57  ;;  %v196_v62 = vmax.f32 %v172_v59, 0.0 }
  0xe9   :  { %316 = vmatpush3.bf16.xpose.msra.mxu1 %v206_v60  ;;  %v205_v1 = vpack.c.bf16 %v196_v62, %v195_v63 }
  0xea   :  { %317 = vmatprep.subr.bf16.mxu1 %v363_v25 }
  0xf1   :  { %318 = vmatpush3.bf16.xpose.msra.mxu1 %v205_v1 }
  0xf2   :  { %319 = vmatprep.subr.bf16.mxu1 %v363_v25 }
  0xf9   :  { %320 = vmatpush3.bf16.xpose.msra.mxu1 %v204_v5 }
  0xfa   :  { %321 = vmatprep.subr.bf16.mxu1 %v363_v25 }
 0x101   :  { %322 = vmatpush3.bf16.xpose.msra.mxu1 %v203_v11 }
 0x102   :  { %323 = vmatprep.subr.bf16.mxu1 %v363_v25 }
 0x109   :  { %324 = vmatpush3.bf16.xpose.msra.mxu1 %v202_v15 }
 0x10a   :  { %325 = vmatprep.subr.bf16.mxu1 %v363_v25 }
 0x111   :  { %326 = vmatpush3.bf16.xpose.msra.mxu1 %v201_v20 }
 0x112   :  { %327 = vmatprep.subr.bf16.mxu1 %v363_v25 }
 0x119   :  { %328 = vmatpush3.bf16.xpose.msra.mxu1 %v200_v41 }
 0x11a   :  { %329 = vmatprep.subr.bf16.mxu1 %v363_v25 }
 0x121   :  { %330 = vmatpush3.bf16.xpose.msra.mxu1 %v199_v44 }
 0x128   :  { %332 = vmatmul.mubr.bf16.vlgmr.msra.gmra.mxu1 %v207_v21 }
 0x1e8   :  { %v248_v23 = vpop.f32.mrf.mxu1 }
 0x1e9   :  { %v249_v24 = vadd.f32 %v248_v23, %v212_v22 }
 0x1ea   :  { %v333_v26 = vpop.f32.mrf.mxu1 }
 0x1eb   :  { %254 = vst [vmem:[#allocation2] sm:$0xff] %v249_v24 }
 0x1ec   :  { %v251_v27 = vpop.f32.mrf.mxu1 }
 0x1ed   :  { %352 = shalt.err (!%p349_p4)
}
 0x1ee   :  { %264 = dma.vmem_to_hbm [thread:$0]  %s262_s29, 128, %s482_s5, [#allocation3]   ;;  %v334_v25 = vpop.f32.mrf.mxu1 }
 0x1ef   :  { %361 = dma.done.wait [#allocation3], 128  }
 0x1f0   :  { %362 = vsyncadd [#allocation3], 4294967168 }
 0x1f1   :  { %268 = vsyncpa [#allocation3], 1 }

</bundles_post_ra>
